<compile_context>
chip_gen: v6e
topology: v6e:2x2x1
jax: 0.10.0
libtpu: 0.0.40
codegen_flags: <defaults>
</compile_context>

<pallas_src>
import jax
import jax.numpy as jnp
from jax.experimental import pallas as pl
from jax.experimental.pallas import tpu as pltpu

FEAT_DIM = 384        # DeiT-small hidden size
HIDDEN_DIM = 128      # config.hidden_dim
HIDDEN2_DIM = 64      # config.hidden_dim // 2
NUM_CLASSES = 100     # config.num_classes

HIDDEN2_PAD = 128     # lane-dense padding for the 64-wide hidden
OUT_PAD = 128         # lane-dense padding for the 100-wide logits


def _round_up(x, m):
    return ((x + m - 1) // m) * m


def _choose_tb(B):
    """Batch tile: minimal padding for small B, big tiles (but >=2 grid steps) for large B."""
    if B <= 512:
        return max(16, _round_up(B, 16))          # single grid step, sublane-packed
    for tb in (2048, 1024, 512, 256):             # largest tile that still gives >= 2 steps
        if B >= 2 * tb:
            return tb
    return 256


def _mlp_kernel(x_ref, w1_ref, b1_ref, w2_ref, b2_ref, w3_ref, b3_ref, o_ref):
    # Fused Linear->ReLU->Linear->ReLU->Linear (Dropout = identity at inference).
    # f32 input cast to bf16 in-kernel; bf16 MXU operands, f32 accumulation,
    # f32 bias/ReLU on the VPU; bf16 store.
    x = x_ref[...].astype(jnp.bfloat16)                                   # [TB, 384]
    h1 = jnp.dot(x, w1_ref[...], preferred_element_type=jnp.float32) + b1_ref[...]
    h1 = jnp.maximum(h1, 0.0).astype(jnp.bfloat16)                        # [TB, 128]
    h2 = jnp.dot(h1, w2_ref[...], preferred_element_type=jnp.float32) + b2_ref[...]
    h2 = jnp.maximum(h2, 0.0).astype(jnp.bfloat16)                        # [TB, 128] (cols 64: = 0)
    o_ref[...] = (jnp.dot(h2, w3_ref[...], preferred_element_type=jnp.float32)
                  + b3_ref[...]).astype(o_ref.dtype)                      # bf16 [TB, 128]


def classifier_forward(pooled_output, params):
    """pooled_output: [B, 384] float32. Returns logits [B, NUM_CLASSES] bfloat16."""
    w1, b1, w2, b2, w3, b3 = params
    B = pooled_output.shape[0]

    TB = _choose_tb(B)
    B_pad = _round_up(B, TB)
    x = pooled_output
    if B_pad != B:
        # Only pad when needed; no standalone dtype-cast pass (cast happens in-kernel).
        x = jnp.pad(x, ((0, B_pad - B), (0, 0)))

    # One-time (tiny) weight preparation: bf16 MXU operands, lane-dense zero padding
    # of the narrow layers so the slice-back is exact.
    w1b = w1.astype(jnp.bfloat16)                                                      # [384,128]
    b1f = b1.astype(jnp.float32)                                                       # [1,128]
    w2b = jnp.pad(w2, ((0, 0), (0, HIDDEN2_PAD - HIDDEN2_DIM))).astype(jnp.bfloat16)   # [128,128]
    b2f = jnp.pad(b2, ((0, 0), (0, HIDDEN2_PAD - HIDDEN2_DIM))).astype(jnp.float32)    # [1,128]
    w3b = jnp.pad(w3, ((0, HIDDEN2_PAD - HIDDEN2_DIM),
                       (0, OUT_PAD - NUM_CLASSES))).astype(jnp.bfloat16)                # [128,128]
    b3f = jnp.pad(b3, ((0, 0), (0, OUT_PAD - NUM_CLASSES))).astype(jnp.float32)         # [1,128]

    grid = (B_pad // TB,)

    def resident(shape):
        return pl.BlockSpec(shape, lambda i: (0, 0))   # same block every step -> stays in VMEM

    weight_bytes = (FEAT_DIM * HIDDEN_DIM + HIDDEN_DIM * HIDDEN2_PAD
                    + HIDDEN2_PAD * OUT_PAD) * 2 + 3 * OUT_PAD * 4
    cost = pl.CostEstimate(
        flops=2 * B_pad * (FEAT_DIM * HIDDEN_DIM + HIDDEN_DIM * HIDDEN2_PAD
                           + HIDDEN2_PAD * OUT_PAD),
        transcendentals=0,
        bytes_accessed=B_pad * FEAT_DIM * 4 + B_pad * OUT_PAD * 2 + weight_bytes,
    )

    out = pl.pallas_call(
        _mlp_kernel,
        out_shape=jax.ShapeDtypeStruct((B_pad, OUT_PAD), jnp.bfloat16),
        grid=grid,
        in_specs=[
            pl.BlockSpec((TB, FEAT_DIM), lambda i: (i, 0)),   # streamed f32 batch tiles
            resident((FEAT_DIM, HIDDEN_DIM)),
            resident((1, HIDDEN_DIM)),
            resident((HIDDEN_DIM, HIDDEN2_PAD)),
            resident((1, HIDDEN2_PAD)),
            resident((HIDDEN2_PAD, OUT_PAD)),
            resident((1, OUT_PAD)),
        ],
        out_specs=pl.BlockSpec((TB, OUT_PAD), lambda i: (i, 0)),
        compiler_params=pltpu.CompilerParams(
            dimension_semantics=("parallel",),   # shards batch tiles across TCs on v7x
        ),
        cost_estimate=cost,
    )(x, w1b, b1f, w2b, b2f, w3b, b3f)

    # Cheap slice back to the module's logits shape; consumers that can handle the
    # padded [B_pad, 128] slab should fuse/skip this.
    return out[:B, :NUM_CLASSES]


def init_params(key):
    """Deterministic parameter init matching the nn.Sequential classifier shapes."""
    k1, k2, k3, k4, k5, k6 = jax.random.split(key, 6)

    def linear(kw, kb, fan_in, fan_out):
        bound = 1.0 / jnp.sqrt(fan_in)
        w = jax.random.uniform(kw, (fan_in, fan_out), jnp.float32, -bound, bound)
        b = jax.random.uniform(kb, (1, fan_out), jnp.float32, -bound, bound)
        return w, b

    w1, b1 = linear(k1, k2, FEAT_DIM, HIDDEN_DIM)        # Linear(384, 128)
    w2, b2 = linear(k3, k4, HIDDEN_DIM, HIDDEN2_DIM)     # Linear(128, 64)
    w3, b3 = linear(k5, k6, HIDDEN2_DIM, NUM_CLASSES)    # Linear(64, 100)
    return (w1, b1, w2, b2, w3, b3)


def reference_forward(pooled_output, params):
    """Mirrors the kernel's bf16-operand / f32-accumulate pipeline (f32 result)."""
    w1, b1, w2, b2, w3, b3 = params
    xb = pooled_output.astype(jnp.bfloat16)
    h1 = jnp.maximum(
        jnp.dot(xb, w1.astype(jnp.bfloat16), preferred_element_type=jnp.float32) + b1, 0.0)
    h2 = jnp.maximum(
        jnp.dot(h1.astype(jnp.bfloat16), w2.astype(jnp.bfloat16),
                preferred_element_type=jnp.float32) + b2, 0.0)
    return jnp.dot(h2.astype(jnp.bfloat16), w3.astype(jnp.bfloat16),
                   preferred_element_type=jnp.float32) + b3


if __name__ == "__main__":
    key = jax.random.PRNGKey(0)
    k_params, k_x = jax.random.split(key)

    params = init_params(k_params)
    # Pooled CLS features (what outputs.last_hidden_state[:, 0] would produce).
    pooled = jax.random.normal(k_x, (2, FEAT_DIM), jnp.float32)

    logits = classifier_forward(pooled, params)
    logits = jax.block_until_ready(logits)

    ref = reference_forward(pooled, params)
    assert logits.shape == (2, NUM_CLASSES)
    assert logits.dtype == jnp.bfloat16
    # bf16 output store -> relaxed tolerance vs the f32-stored reference.
    assert jnp.allclose(logits.astype(jnp.float32), ref, atol=5e-2, rtol=5e-2), float(
        jnp.max(jnp.abs(logits.astype(jnp.float32) - ref)))

    print("KERNEL_OK")
</pallas_src>

<mosaic_0001>
module attributes {stable_mosaic.version = 11 : i64} {
  func.func @_mlp_kernel(%arg0: i32, %arg1: memref<16x384xf32, #tpu.memory_space<vmem>>, %arg2: memref<384x128xbf16, #tpu.memory_space<vmem>>, %arg3: memref<1x128xf32, #tpu.memory_space<vmem>>, %arg4: memref<128x128xbf16, #tpu.memory_space<vmem>>, %arg5: memref<1x128xf32, #tpu.memory_space<vmem>>, %arg6: memref<128x128xbf16, #tpu.memory_space<vmem>>, %arg7: memref<1x128xf32, #tpu.memory_space<vmem>>, %arg8: memref<16x128xbf16, #tpu.memory_space<vmem>>) attributes {dimension_semantics = [#tpu.dimension_semantics<parallel>], iteration_bounds = array<i64: 1>, scalar_prefetch = 0 : i64, scratch_operands = 0 : i64, tpu.core_type = #tpu.core_type<tc>, window_params = [{transform_indices = @transform_0, window_bounds = array<i64: 16, 384>}, {pipeline_mode = #tpu.pipeline_mode<synchronous>, transform_indices = @transform_1, window_bounds = array<i64: 384, 128>}, {pipeline_mode = #tpu.pipeline_mode<synchronous>, transform_indices = @transform_2, window_bounds = array<i64: 1, 128>}, {pipeline_mode = #tpu.pipeline_mode<synchronous>, transform_indices = @transform_3, window_bounds = array<i64: 128, 128>}, {pipeline_mode = #tpu.pipeline_mode<synchronous>, transform_indices = @transform_4, window_bounds = array<i64: 1, 128>}, {pipeline_mode = #tpu.pipeline_mode<synchronous>, transform_indices = @transform_5, window_bounds = array<i64: 128, 128>}, {pipeline_mode = #tpu.pipeline_mode<synchronous>, transform_indices = @transform_6, window_bounds = array<i64: 1, 128>}, {transform_indices = @transform_7, window_bounds = array<i64: 16, 128>}]} {
    %c0 = arith.constant 0 : index
    %c0_0 = arith.constant 0 : index
    %0 = vector.load %arg1[%c0, %c0_0] : memref<16x384xf32, #tpu.memory_space<vmem>>, vector<16x384xf32>
    %1 = arith.truncf %0 : vector<16x384xf32> to vector<16x384xbf16>
    %c0_1 = arith.constant 0 : index
    %c0_2 = arith.constant 0 : index
    %2 = vector.load %arg2[%c0_1, %c0_2] : memref<384x128xbf16, #tpu.memory_space<vmem>>, vector<384x128xbf16>
    %cst = arith.constant dense<0.000000e+00> : vector<16x128xf32>
    %3 = tpu.matmul %1, %2, %cst {dimension_numbers = #tpu.dot_dimension_numbers<[1], [0], [0], [1], [0, 0, 1, 1], [], []>} : vector<16x384xbf16>, vector<384x128xbf16>, vector<16x128xf32> -> vector<16x128xf32>
    %c0_3 = arith.constant 0 : index
    %c0_4 = arith.constant 0 : index
    %4 = vector.load %arg3[%c0_3, %c0_4] : memref<1x128xf32, #tpu.memory_space<vmem>>, vector<1x128xf32>
    %5 = vector.broadcast %4 : vector<1x128xf32> to vector<16x128xf32>
    %6 = arith.addf %3, %5 : vector<16x128xf32>
    %cst_5 = arith.constant 0.000000e+00 : f32
    %7 = vector.broadcast %cst_5 : f32 to vector<16x128xf32>
    %8 = arith.maximumf %6, %7 : vector<16x128xf32>
    %9 = arith.truncf %8 : vector<16x128xf32> to vector<16x128xbf16>
    %c0_6 = arith.constant 0 : index
    %c0_7 = arith.constant 0 : index
    %10 = vector.load %arg4[%c0_6, %c0_7] : memref<128x128xbf16, #tpu.memory_space<vmem>>, vector<128x128xbf16>
    %cst_8 = arith.constant dense<0.000000e+00> : vector<16x128xf32>
    %11 = tpu.matmul %9, %10, %cst_8 {dimension_numbers = #tpu.dot_dimension_numbers<[1], [0], [0], [1], [0, 0, 1, 1], [], []>} : vector<16x128xbf16>, vector<128x128xbf16>, vector<16x128xf32> -> vector<16x128xf32>
    %c0_9 = arith.constant 0 : index
    %c0_10 = arith.constant 0 : index
    %12 = vector.load %arg5[%c0_9, %c0_10] : memref<1x128xf32, #tpu.memory_space<vmem>>, vector<1x128xf32>
    %13 = vector.broadcast %12 : vector<1x128xf32> to vector<16x128xf32>
    %14 = arith.addf %11, %13 : vector<16x128xf32>
    %cst_11 = arith.constant 0.000000e+00 : f32
    %15 = vector.broadcast %cst_11 : f32 to vector<16x128xf32>
    %16 = arith.maximumf %14, %15 : vector<16x128xf32>
    %17 = arith.truncf %16 : vector<16x128xf32> to vector<16x128xbf16>
    %c0_12 = arith.constant 0 : index
    %c0_13 = arith.constant 0 : index
    %18 = vector.load %arg6[%c0_12, %c0_13] : memref<128x128xbf16, #tpu.memory_space<vmem>>, vector<128x128xbf16>
    %cst_14 = arith.constant dense<0.000000e+00> : vector<16x128xf32>
    %19 = tpu.matmul %17, %18, %cst_14 {dimension_numbers = #tpu.dot_dimension_numbers<[1], [0], [0], [1], [0, 0, 1, 1], [], []>} : vector<16x128xbf16>, vector<128x128xbf16>, vector<16x128xf32> -> vector<16x128xf32>
    %c0_15 = arith.constant 0 : index
    %c0_16 = arith.constant 0 : index
    %20 = vector.load %arg7[%c0_15, %c0_16] : memref<1x128xf32, #tpu.memory_space<vmem>>, vector<1x128xf32>
    %21 = vector.broadcast %20 : vector<1x128xf32> to vector<16x128xf32>
    %22 = arith.addf %19, %21 : vector<16x128xf32>
    %23 = arith.truncf %22 : vector<16x128xf32> to vector<16x128xbf16>
    %c0_17 = arith.constant 0 : index
    %c0_18 = arith.constant 0 : index
    %24 = vector.load %arg8[%c0_17, %c0_18] : memref<16x128xbf16, #tpu.memory_space<vmem>>, vector<16x128xbf16>
    tpu.vector_store %arg8[%c0_17, %c0_18], %23 {strides = array<i32>} : memref<16x128xbf16, #tpu.memory_space<vmem>>, vector<16x128xbf16>,
    return
  }
  func.func @transform_0(%arg0: i32) -> (i32, i32) {
    %c0_i32 = arith.constant 0 : i32
    %c0_i32_0 = arith.constant 0 : i32
    return %arg0, %c0_i32 : i32, i32
  }
  func.func @transform_1(%arg0: i32) -> (i32, i32) {
    %c0_i32 = arith.constant 0 : i32
    %c0_i32_0 = arith.constant 0 : i32
    %c0_i32_1 = arith.constant 0 : i32
    return %c0_i32, %c0_i32_0 : i32, i32
  }
  func.func @transform_2(%arg0: i32) -> (i32, i32) {
    %c0_i32 = arith.constant 0 : i32
    %c0_i32_0 = arith.constant 0 : i32
    %c0_i32_1 = arith.constant 0 : i32
    return %c0_i32, %c0_i32_0 : i32, i32
  }
  func.func @transform_3(%arg0: i32) -> (i32, i32) {
    %c0_i32 = arith.constant 0 : i32
    %c0_i32_0 = arith.constant 0 : i32
    %c0_i32_1 = arith.constant 0 : i32
    return %c0_i32, %c0_i32_0 : i32, i32
  }
  func.func @transform_4(%arg0: i32) -> (i32, i32) {
    %c0_i32 = arith.constant 0 : i32
    %c0_i32_0 = arith.constant 0 : i32
    %c0_i32_1 = arith.constant 0 : i32
    return %c0_i32, %c0_i32_0 : i32, i32
  }
  func.func @transform_5(%arg0: i32) -> (i32, i32) {
    %c0_i32 = arith.constant 0 : i32
    %c0_i32_0 = arith.constant 0 : i32
    %c0_i32_1 = arith.constant 0 : i32
    return %c0_i32, %c0_i32_0 : i32, i32
  }
  func.func @transform_6(%arg0: i32) -> (i32, i32) {
    %c0_i32 = arith.constant 0 : i32
    %c0_i32_0 = arith.constant 0 : i32
    %c0_i32_1 = arith.constant 0 : i32
    return %c0_i32, %c0_i32_0 : i32, i32
  }
  func.func @transform_7(%arg0: i32) -> (i32, i32) {
    %c0_i32 = arith.constant 0 : i32
    %c0_i32_0 = arith.constant 0 : i32
    return %arg0, %c0_i32 : i32, i32
  }
}

</mosaic_0001>

<bundles_post_ra>
// kernel: tpu_custom_call.1
= control target key start
LH: loop header
LB: loop body
LE: loop exit
PB: predicated region body
PF: predicated region fallthrough
CT: control target
= control target key end

     0   :  { %12 = vsyncpa [#allocation3], 0  ;;  %s1069_s0 = inlined_call_operand.hbm [shape: f32[16,384], index: 0, kind: input, shape index: {}]   ;;  %s1070_s1 = inlined_call_operand.hbm [shape: bf16[384,128], index: 1, kind: input, shape index: {}]   ;;  %s1071_s2 = inlined_call_operand.vmem [shape: f32[1,128], index: 2, kind: input, shape index: {}]   ;;  %s1072_s3 = inlined_call_operand.hbm [shape: bf16[128,128], index: 3, kind: input, shape index: {}]   ;;  %s1073_s4 = inlined_call_operand.vmem [shape: f32[1,128], index: 4, kind: input, shape index: {}]   ;;  %s1074_s5 = inlined_call_operand.hbm [shape: bf16[128,128], index: 5, kind: input, shape index: {}]   ;;  %s1075_s6 = inlined_call_operand.vmem [shape: f32[1,128], index: 6, kind: input, shape index: {}]   ;;  %s1076_s7 = inlined_call_operand.hbm [shape: bf16[16,128], index: 7, kind: output, shape index: {}]  }
   0x1   :  { %13 = vsyncpa [#allocation6], 0 }
   0x2   :  { %14 = vsyncpa [#allocation9], 0 }
   0x3   :  { %15 = vsyncpa [#allocation4], 0  ;;  %s952_s24 = smov [#allocation5]  }
   0x4   :  { %s33_s25 = sshll.u32 %s952_s24, 4  ;;  %s34_s25 = int_to_ptr.vmem [resolvable:$true] %s33_s25 }
   0x5   :  { %s852_s26 = scalar_lea.vmem %s34_s25, 3072  ;;  %p857_p1 = scmp.lt.s32.totalorder %s34_s25, %s34_s25 }
   0x6   :  { %p853_p0 = scmp.ne.s32.totalorder %s34_s25, %s852_s26  ;;  %p858_p2 = scmp.lt.s32.totalorder %s852_s26, %s852_s26 }
   0x8   :  { %p859_p3 = por %p858_p2, %p857_p1 }
   0xa   :  { %p860_p4 = pnand %p859_p3, %p853_p0 }
   0xc   :  { %863 = shalt.err (!%p860_p4)
}
   0xd   :  { %s953_s27 = smov 64   ;;  %s954_s28 = smov 4  }
   0xe   :  { %39 = dma.hbm_to_vmem [thread:$0]  %s1070_s1, 3072, %s34_s25, [#allocation6], %s953_s27, %s953_s27, %s954_s28  }
   0xf   :  { %s955_s8 = smov [#allocation2]  }
  0x10   :  { %s21_s9 = sshll.u32 %s955_s8, 4  ;;  %s22_s9 = int_to_ptr.vmem [resolvable:$true] %s21_s9 }
  0x11   :  { %s872_s10 = scalar_lea.vmem %s22_s9, 768  ;;  %p877_p6 = scmp.lt.s32.totalorder %s22_s9, %s22_s9 }
  0x12   :  { %p873_p5 = scmp.ne.s32.totalorder %s22_s9, %s872_s10  ;;  %p878_p7 = scmp.lt.s32.totalorder %s872_s10, %s872_s10 }
  0x14   :  { %p879_p8 = por %p878_p7, %p877_p6 }
  0x16   :  { %p880_p9 = pnand %p879_p8, %p873_p5 }
  0x18   :  { %883 = shalt.err (!%p880_p9)
}
  0x19   :  { %s956_s11 = smov 384   ;;  %s957_s12 = smov 24  }
  0x1a   :  { %27 = dma.hbm_to_vmem [thread:$0]  %s1069_s0, 768, %s22_s9, [#allocation3], %s956_s11, %s956_s11, %s957_s12  }
  0x1b   :  { %s958_s15 = smov [#allocation7]   ;;  %s959_s17 = smov [#allocation8]  }
  0x1c   :  { %s47_s16 = sshll.u32 %s958_s15, 4  ;;  %s61_s1 = sshll.u32 %s959_s17, 4  ;;  %s48_s16 = int_to_ptr.vmem [resolvable:$true] %s47_s16  ;;  %s62_s1 = int_to_ptr.vmem [resolvable:$true] %s61_s1 }
  0x1d   :  { %s892_s18 = scalar_lea.vmem %s48_s16, 1024  ;;  %p897_p11 = scmp.lt.s32.totalorder %s48_s16, %s48_s16 }
  0x1e   :  { %p893_p10 = scmp.ne.s32.totalorder %s48_s16, %s892_s18  ;;  %p898_p12 = scmp.lt.s32.totalorder %s892_s18, %s892_s18 }
  0x20   :  { %p899_p13 = por %p898_p12, %p897_p11 }
  0x22   :  { %p900_p0 = pnand %p899_p13, %p893_p10 }
  0x24   :  { %903 = shalt.err (!%p900_p0)
}
  0x25   :  { %53 = dma.hbm_to_vmem [thread:$0]  %s1072_s3, 1024, %s48_s16, [#allocation6], %s953_s27, %s953_s27, %s954_s28  }
  0x26   :  { %s912_s0 = scalar_lea.vmem %s62_s1, 1024  ;;  %p917_p2 = scmp.lt.s32.totalorder %s62_s1, %s62_s1 }
  0x27   :  { %p913_p1 = scmp.ne.s32.totalorder %s62_s1, %s912_s0  ;;  %p918_p3 = scmp.lt.s32.totalorder %s912_s0, %s912_s0 }
  0x29   :  { %p919_p4 = por %p918_p3, %p917_p2 }
  0x2b   :  { %p920_p5 = pnand %p919_p4, %p913_p1 }
  0x2d   :  { %923 = shalt.err (!%p920_p5)
}
  0x2e   :  { %67 = dma.hbm_to_vmem [thread:$0]  %s1074_s5, 1024, %s62_s1, [#allocation9], %s953_s27, %s953_s27, %s954_s28  }
  0x2f   :  { %944 = dma.done.wait [#allocation3], 768  }
  0x30   :  { %945 = vsyncadd [#allocation3], 4294966528 }
  0x31   :  { %946 = dma.done.wait [#allocation6], 4096  }
  0x32   :  { %947 = vsyncadd [#allocation6], 4294963200 }
  0x33   :  { %948 = dma.done.wait [#allocation9], 1024  }
  0x34   :  { %949 = vsyncadd [#allocation9], 4294966272  ;;  %v960_v0 = vmov 0.0   ;;  %vm961_vm0 = vmmov 0   ;;  %v804_v1 = vld [vmem:[#allocation5 + $0x78] sm:$0xff]   ;;  %v807_v4 = vld [vmem:[#allocation5 + $0x70] sm:$0xff]  }
  0x35   :  { %733 = vmatprep.subr.bf16.mxu1 %v960_v0  ;;  %749 = vmatprep.mubr.msk.bf16.mxu1 %vm961_vm0, %v960_v0  ;;  %v805_v2 = vld [vmem:[#allocation5 + $0x38] sm:$0xff]   ;;  %v808_v5 = vld [vmem:[#allocation5 + $0x30] sm:$0xff]   ;;  %v810_v7 = vld [vmem:[#allocation5 + $0x68] sm:$0xff]   ;;  %s962_s26 = smov [#allocation10]  }
  0x36   :  { %684 = vmatprep.subr.bf16.mxu0 %v804_v1  ;;  %v806_v3 = vld [vmem:[#allocation5 + $0xb8] sm:$0xff]   ;;  %v809_v6 = vld [vmem:[#allocation5 + $0xb0] sm:$0xff]   ;;  %v811_v8 = vld [vmem:[#allocation5 + $0x28] sm:$0xff]   ;;  %s618_s29 = sshll.u32 %s962_s26, 4  ;;  %s619_s29 = int_to_ptr.vmem [resolvable:$true] %s618_s29 }
  0x37   :  { %685 = vmatpush3.bf16.msra.mxu0 %v805_v2  ;;  %734 = vmatpush3.bf16.msra.mxu1 %v806_v3  ;;  %v812_v9 = vld [vmem:[#allocation5 + $0xa8] sm:$0xff]   ;;  %v813_v10 = vld [vmem:[#allocation5 + $0x60] sm:$0xff]   ;;  %v816_v13 = vld [vmem:[#allocation5 + $0x58] sm:$0xff]   ;;  %p929_p7 = scmp.lt.s32.totalorder %s619_s29, %s619_s29 }
  0x38   :  { %686 = vmatprep.subr.bf16.mxu0 %v807_v4  ;;  %735 = vmatprep.subr.bf16.mxu1 %v960_v0  ;;  %v814_v11 = vld [vmem:[#allocation5 + $0x20] sm:$0xff]   ;;  %v817_v14 = vld [vmem:[#allocation5 + $0x18] sm:$0xff]   ;;  %v819_v16 = vld [vmem:[#allocation5 + $0x50] sm:$0xff]  }
  0x39   :  { %v815_v12 = vld [vmem:[#allocation5 + $0xa0] sm:$0xff]   ;;  %v818_v15 = vld [vmem:[#allocation5 + $0x98] sm:$0xff]   ;;  %v820_v17 = vld [vmem:[#allocation5 + $0x10] sm:$0xff]  }
  0x3a   :  { %v821_v18 = vld [vmem:[#allocation5 + $0x90] sm:$0xff]   ;;  %v822_v19 = vld [vmem:[#allocation5 + $0x48] sm:$0xff]   ;;  %v825_v22 = vld [vmem:[#allocation5 + $0x40] sm:$0xff]  }
  0x3b   :  { %687 = vmatpush3.bf16.msra.mxu0 %v808_v5  ;;  %736 = vmatpush3.bf16.msra.mxu1 %v809_v6  ;;  %v823_v20 = vld [vmem:[#allocation5 + $0x8] sm:$0xff]   ;;  %v84_v23 = vld [vmem:[#allocation2 + $0x8] sm:$0xff]  ;;  %v87_v24 = vld [vmem:[#allocation2 + $0x20] sm:$0xff] }
  0x3c   :  { %688 = vmatprep.subr.bf16.mxu0 %v810_v7  ;;  %737 = vmatprep.subr.bf16.mxu1 %v960_v0  ;;  %v824_v21 = vld [vmem:[#allocation5 + $0x88] sm:$0xff]   ;;  %v826_v25 = vld [vmem:[#allocation5] sm:$0xff]   ;;  %v90_v26 = vpack.c.bf16 %v87_v24, %v84_v23  ;;  %v83_v27 = vld [vmem:[#allocation2] sm:$0xff] }
  0x3d   :  { %v827_v28 = vld [vmem:[#allocation5 + $0x80] sm:$0xff]   ;;  %v86_v29 = vld [vmem:[#allocation2 + $0x18] sm:$0xff]  ;;  %v88_v31 = vld [vmem:[#allocation2 + $0x28] sm:$0xff] }
  0x3e   :  { %323 = vmatprep.mubr.bf16.mxu0 %v90_v26  ;;  %v85_v30 = vld [vmem:[#allocation2 + $0x10] sm:$0xff]  ;;  %v828_v32 = vld [vmem:[#allocation7 + $0x38] sm:$0xff]   ;;  %v89_v33 = vpack.c.bf16 %v86_v29, %v83_v27  ;;  %v829_v35 = vld [vmem:[#allocation7 + $0x30] sm:$0xff]  }
  0x3f   :  { %689 = vmatpush3.bf16.msra.mxu0 %v811_v8  ;;  %738 = vmatpush3.bf16.msra.mxu1 %v812_v9  ;;  %v91_v34 = vpack.c.bf16 %v88_v31, %v85_v30  ;;  %v830_v36 = vld [vmem:[#allocation7 + $0x28] sm:$0xff]   ;;  %v831_v37 = vld [vmem:[#allocation7 + $0x20] sm:$0xff]   ;;  %v832_v38 = vld [vmem:[#allocation7 + $0x18] sm:$0xff]  }
  0x40   :  { %690 = vmatprep.subr.bf16.mxu0 %v813_v10  ;;  %739 = vmatprep.subr.bf16.mxu1 %v960_v0  ;;  %v833_v39 = vld [vmem:[#allocation7 + $0x10] sm:$0xff]   ;;  %v834_v40 = vld [vmem:[#allocation7 + $0x8] sm:$0xff]   ;;  %v835_v41 = vld [vmem:[#allocation7] sm:$0xff]  }
  0x41   :  { %v836_v42 = vld [vmem:[#allocation8 + $0x38] sm:$0xff]   ;;  %v837_v43 = vld [vmem:[#allocation8 + $0x30] sm:$0xff]   ;;  %v838_v44 = vld [vmem:[#allocation8 + $0x28] sm:$0xff]  }
  0x42   :  { %v839_v45 = vld [vmem:[#allocation8 + $0x20] sm:$0xff]   ;;  %v840_v46 = vld [vmem:[#allocation8 + $0x18] sm:$0xff]   ;;  %v632_v49 = vld [vmem:[%s1071_s2] ss:$0 sm:$0xff] }
  0x43   :  { %691 = vmatpush3.bf16.msra.mxu0 %v814_v11  ;;  %740 = vmatpush3.bf16.msra.mxu1 %v815_v12  ;;  %v841_v2 = vld [vmem:[#allocation8 + $0x10] sm:$0xff]   ;;  %v842_v3 = vld [vmem:[#allocation8 + $0x8] sm:$0xff]   ;;  %v843_v4 = vld [vmem:[#allocation8] sm:$0xff]  }
  0x44   :  { %692 = vmatprep.subr.bf16.mxu0 %v816_v13  ;;  %741 = vmatprep.subr.bf16.mxu1 %v960_v0  ;;  %v657_v5 = vld [vmem:[%s1073_s4] ss:$0 sm:$0xff]  ;;  %s924_s4 = scalar_lea.vmem %s619_s29, 128 }
  0x45   :  { %p925_p6 = scmp.ne.s32.totalorder %s619_s29, %s924_s4  ;;  %p930_p8 = scmp.lt.s32.totalorder %s924_s4, %s924_s4 }
  0x47   :  { %693 = vmatpush3.bf16.msra.mxu0 %v817_v14  ;;  %742 = vmatpush3.bf16.msra.mxu1 %v818_v15  ;;  %p931_p9 = por %p930_p8, %p929_p7 }
  0x48   :  { %694 = vmatprep.subr.bf16.mxu0 %v819_v16  ;;  %743 = vmatprep.subr.bf16.mxu1 %v960_v0 }
  0x49   :  { %p932_p10 = pnand %p931_p9, %p925_p6 }
  0x4b   :  { %695 = vmatpush3.bf16.msra.mxu0 %v820_v17  ;;  %744 = vmatpush3.bf16.msra.mxu1 %v821_v18 }
  0x4c   :  { %696 = vmatprep.subr.bf16.mxu0 %v822_v19  ;;  %745 = vmatprep.subr.bf16.mxu1 %v960_v0 }
  0x4f   :  { %697 = vmatpush3.bf16.msra.mxu0 %v823_v20  ;;  %746 = vmatpush3.bf16.msra.mxu1 %v824_v21 }
  0x50   :  { %698 = vmatprep.subr.bf16.mxu0 %v825_v22  ;;  %747 = vmatprep.subr.bf16.mxu1 %v960_v0 }
  0x53   :  { %699 = vmatpush3.bf16.msra.mxu0 %v826_v25  ;;  %748 = vmatpush3.bf16.msra.mxu1 %v827_v28 }
  0x54   :  { %753 = vmatprep.subr.bf16.mxu0 %v960_v0  ;;  %773 = vmatprep.subr.bf16.mxu1 %v960_v0 }
  0x56   :  { %324 = vmatmul.mubr.bf16.vlgmr.msra.gmra.mxu0 %v89_v33  ;;  %750 = vmatmul.mubr.bf16.vlgmr.msra.gmra.mxu1 %v91_v34 }
  0x57   :  { %754 = vmatpush3.bf16.msra.mxu0 %v828_v32  ;;  %769 = vmatprep.mubr.msk.bf16.mxu0 %vm961_vm0, %v960_v0 }
  0x58   :  { %755 = vmatprep.subr.bf16.mxu0 %v960_v0  ;;  %789 = vmatprep.mubr.msk.bf16.mxu1 %vm961_vm0, %v960_v0 }
  0x59   :  { %774 = vmatpush3.bf16.msra.mxu1 %v836_v42 }
  0x5a   :  { %775 = vmatprep.subr.bf16.mxu1 %v960_v0 }
  0x5b   :  { %756 = vmatpush3.bf16.msra.mxu0 %v829_v35 }
  0x5c   :  { %757 = vmatprep.subr.bf16.mxu0 %v960_v0 }
  0x5d   :  { %776 = vmatpush3.bf16.msra.mxu1 %v837_v43 }
  0x5e   :  { %777 = vmatprep.subr.bf16.mxu1 %v960_v0 }
  0x5f   :  { %758 = vmatpush3.bf16.msra.mxu0 %v830_v36 }
  0x60   :  { %759 = vmatprep.subr.bf16.mxu0 %v960_v0 }
  0x61   :  { %778 = vmatpush3.bf16.msra.mxu1 %v838_v44 }
  0x62   :  { %779 = vmatprep.subr.bf16.mxu1 %v960_v0 }
  0x63   :  { %760 = vmatpush3.bf16.msra.mxu0 %v831_v37 }
  0x64   :  { %761 = vmatprep.subr.bf16.mxu0 %v960_v0 }
  0x65   :  { %780 = vmatpush3.bf16.msra.mxu1 %v839_v45 }
  0x66   :  { %781 = vmatprep.subr.bf16.mxu1 %v960_v0 }
  0x67   :  { %762 = vmatpush3.bf16.msra.mxu0 %v832_v38 }
  0x68   :  { %763 = vmatprep.subr.bf16.mxu0 %v960_v0 }
  0x69   :  { %782 = vmatpush3.bf16.msra.mxu1 %v840_v46 }
  0x6a   :  { %783 = vmatprep.subr.bf16.mxu1 %v960_v0 }
  0x6b   :  { %764 = vmatpush3.bf16.msra.mxu0 %v833_v39 }
  0x6c   :  { %765 = vmatprep.subr.bf16.mxu0 %v960_v0 }
  0x6d   :  { %784 = vmatpush3.bf16.msra.mxu1 %v841_v2 }
  0x6e   :  { %785 = vmatprep.subr.bf16.mxu1 %v960_v0 }
  0x6f   :  { %766 = vmatpush3.bf16.msra.mxu0 %v834_v40 }
  0x70   :  { %767 = vmatprep.subr.bf16.mxu0 %v960_v0 }
  0x71   :  { %786 = vmatpush3.bf16.msra.mxu1 %v842_v3 }
  0x72   :  { %787 = vmatprep.subr.bf16.mxu1 %v960_v0  ;;  %v666_v0 = vld [vmem:[%s1075_s6] ss:$0 sm:$0xff] }
  0x73   :  { %768 = vmatpush3.bf16.msra.mxu0 %v835_v41 }
  0x75   :  { %788 = vmatpush3.bf16.msra.mxu1 %v843_v4 }
 0x116   :  { %v700_v47 = vpop.f32.mrf.mxu0  ;;  %v366_v48 = vpop.f32.mrf.mxu1 }
 0x118   :  { %v701_v50 = vpop.f32.mrf.mxu0  ;;  %v751_v52 = vpop.f32.mrf.mxu1 }
 0x119   :  { %v702_v51 = vadd.f32 %v701_v50, %v700_v47 }
 0x11a   :  { %v703_v53 = vpop.f32.mrf.mxu0  ;;  %v369_v55 = vpop.f32.mrf.mxu1 }
 0x11b   :  { %v326_v54 = vadd.f32 %v702_v51, %v632_v49 }
 0x11c   :  { %v704_v56 = vpop.f32.mrf.mxu0  ;;  %v752_v58 = vpop.f32.mrf.mxu1 }
 0x11d   :  { %v705_v57 = vadd.f32 %v704_v56, %v703_v53  ;;  %v367_v59 = vadd.f32 %v366_v48, %v326_v54 }
 0x11f   :  { %v329_v60 = vadd.f32 %v705_v57, %v632_v49  ;;  %v373_v62 = vmax.f32 %v367_v59, 0.0 }
 0x121   :  { %v370_v61 = vadd.f32 %v369_v55, %v329_v60 }
 0x123   :  { %v374_v63 = vmax.f32 %v370_v61, 0.0 }
 0x125   :  { %v375_v1 = vpack.c.bf16 %v374_v63, %v373_v62 }
 0x127   :  { %770 = vmatmul.mubr.bf16.vlgmr.msra.gmra.mxu0 %v375_v1 }
 0x1e7   :  { %v481_v6 = vpop.f32.mrf.mxu0 }
 0x1e8   :  { %v482_v8 = vadd.f32 %v657_v5, %v481_v6 }
 0x1e9   :  { %v771_v7 = vpop.f32.mrf.mxu0 }
 0x1ea   :  { %v488_v12 = vmax.f32 %v482_v8, 0.0 }
 0x1eb   :  { %v484_v9 = vpop.f32.mrf.mxu0 }
 0x1ec   :  { %v485_v10 = vadd.f32 %v657_v5, %v484_v9 }
 0x1ed   :  { %v772_v11 = vpop.f32.mrf.mxu0 }
 0x1ee   :  { %v489_v13 = vmax.f32 %v485_v10, 0.0 }
 0x1f0   :  { %v490_v14 = vpack.c.bf16 %v489_v13, %v488_v12 }
 0x1f2   :  { %790 = vmatmul.mubr.bf16.vlgmr.msra.gmra.mxu1 %v490_v14 }
 0x2b2   :  { %v596_v15 = vpop.f32.mrf.mxu1 }
 0x2b3   :  { %v597_v18 = vadd.f32 %v666_v0, %v596_v15 }
 0x2b4   :  { %v791_v16 = vpop.f32.mrf.mxu1 }
 0x2b6   :  { %v599_v17 = vpop.f32.mrf.mxu1 }
 0x2b7   :  { %v600_v19 = vadd.f32 %v666_v0, %v599_v17 }
 0x2b8   :  { %v792_v20 = vpop.f32.mrf.mxu1 }
 0x2b9   :  { %v682_v21 = vpack.c.bf16 %v600_v19, %v597_v18 }
 0x2bb   :  { %683 = vst [vmem:[#allocation10] sm:$0xff] %v682_v21  }
 0x2bc   :  { %935 = shalt.err (!%p932_p10)
}
 0x2bd   :  { %624 = dma.vmem_to_hbm [thread:$0]  %s619_s29, 128, %s1076_s7, [#allocation4], %s953_s27, %s953_s27, %s954_s28  }
 0x2be   :  { %950 = dma.done.wait [#allocation4], 128  }
 0x2bf   :  { %951 = vsyncadd [#allocation4], 4294967168 }
 0x2c0   :  { %628 = vsyncpa [#allocation3], 1 }
 0x2c1   :  { %629 = vsyncpa [#allocation6], 1 }
 0x2c2   :  { %630 = vsyncpa [#allocation9], 1 }
 0x2c3   :  { %631 = vsyncpa [#allocation4], 1 }

</bundles_post_ra>
